<compile_context>
chip_gen: v7x
topology: tpu7x:2x2x1
jax: 0.10.0
libtpu: 0.0.40
codegen_flags: <defaults>
</compile_context>

<pallas_src>
import functools

import jax
import jax.numpy as jnp
from jax.experimental import pallas as pl
from jax.experimental.pallas import tpu as pltpu

LANE = 128


def _round_up(n, m):
    return ((n + m - 1) // m) * m


def _pad_axis(x, target, axis):
    pad = target - x.shape[axis]
    if pad <= 0:
        return x
    widths = [(0, 0)] * x.ndim
    widths[axis] = (0, pad)
    return jnp.pad(x, widths)


def rnd_kernel(x_ref, w1_ref, b1_ref, w2_ref, b2_ref, w3_ref, b3_ref, o_ref):
    # Cast streamed f32 state to the compute dtype (bf16 by default) in-kernel.
    x = x_ref[...].astype(w1_ref.dtype)              # (TB, S)
    # Layer 1: Linear(S -> H) + ReLU   (f32 accumulate, f32 bias/ReLU)
    h1 = jnp.dot(x, w1_ref[...], preferred_element_type=jnp.float32) + b1_ref[...]
    h1 = jnp.maximum(h1, 0.0).astype(w2_ref.dtype)
    # Layer 2: Linear(H -> H) + ReLU
    h2 = jnp.dot(h1, w2_ref[...], preferred_element_type=jnp.float32) + b2_ref[...]
    h2 = jnp.maximum(h2, 0.0).astype(w3_ref.dtype)
    # Layer 3: Linear(H -> R), no activation
    out = jnp.dot(h2, w3_ref[...], preferred_element_type=jnp.float32) + b3_ref[...]
    o_ref[...] = out.astype(o_ref.dtype)


def prepare_params(params, use_bf16=True):
    """One-time padding/casting of the weights (call once, reuse every step).

    Weights are stored (in_features, out_features); H and R are padded to lane
    multiples (128), S is left unpadded. Biases stay f32 (bias-add / ReLU run
    in f32 inside the kernel)."""
    cdt = jnp.bfloat16 if use_bf16 else jnp.float32
    w1, b1 = params["w1"], params["b1"]
    w2, b2 = params["w2"], params["b2"]
    w3, b3 = params["w3"], params["b3"]
    H = w1.shape[1]
    R = w3.shape[1]
    H_p = _round_up(H, LANE)
    R_p = _round_up(R, LANE)
    return {
        "w1": _pad_axis(w1, H_p, 1).astype(cdt),                        # (S,  H_p)
        "b1": _pad_axis(b1, H_p, 1).astype(jnp.float32),                # (1,  H_p)
        "w2": _pad_axis(_pad_axis(w2, H_p, 0), H_p, 1).astype(cdt),     # (H_p,H_p)
        "b2": _pad_axis(b2, H_p, 1).astype(jnp.float32),                # (1,  H_p)
        "w3": _pad_axis(_pad_axis(w3, H_p, 0), R_p, 1).astype(cdt),     # (H_p,R_p)
        "b3": _pad_axis(b3, R_p, 1).astype(jnp.float32),                # (1,  R_p)
    }


@functools.partial(jax.jit, static_argnames=("state_rep_size", "block_b"))
def rnd_forward(state, prepared, state_rep_size, *, block_b=1024):
    """state: [B, S] f32; prepared: output of prepare_params()."""
    w1, b1 = prepared["w1"], prepared["b1"]
    w2, b2 = prepared["w2"], prepared["b2"]
    w3, b3 = prepared["w3"], prepared["b3"]

    B, S = state.shape
    H_p = w1.shape[1]
    R_p = w3.shape[1]
    R = state_rep_size

    # Single grid step for modest batches (per-step overhead ~ whole compute);
    # tile only when B exceeds block_b. TB multiple of 16 (packed bf16 sublanes).
    block_b = max(16, _round_up(block_b, 16))
    B_16 = _round_up(B, 16)
    if B_16 <= block_b:
        TB = B_16
        B_p = B_16
    else:
        TB = block_b
        B_p = _round_up(B, TB)

    # Only per-call wrapper op: pad the batch dim (no-op if B % 16 == 0).
    x_p = _pad_axis(state, B_p, 0)                   # (B_p, S) f32, S NOT padded

    grid = (B_p // TB,)

    def resident(shape):
        # Constant block index: DMA'd once, stays VMEM-resident across the grid.
        return pl.BlockSpec(shape, lambda i: (0, 0))

    itemsize = w1.dtype.itemsize
    flops = 2 * B_p * (S * H_p + H_p * H_p + H_p * R_p)
    bytes_accessed = (
        x_p.size * 4
        + (w1.size + w2.size + w3.size) * itemsize
        + (b1.size + b2.size + b3.size) * 4
        + B_p * R_p * 4
    )

    out_p = pl.pallas_call(
        rnd_kernel,
        out_shape=jax.ShapeDtypeStruct((B_p, R_p), jnp.float32),
        grid=grid,
        in_specs=[
            pl.BlockSpec((TB, S), lambda i: (i, 0)),   # streamed batch tile (unpadded S)
            resident((S, H_p)), resident((1, H_p)),    # w1, b1
            resident((H_p, H_p)), resident((1, H_p)),  # w2, b2
            resident((H_p, R_p)), resident((1, R_p)),  # w3, b3
        ],
        out_specs=pl.BlockSpec((TB, R_p), lambda i: (i, 0)),
        compiler_params=pltpu.CompilerParams(
            dimension_semantics=("parallel",),
        ),
        cost_estimate=pl.CostEstimate(
            flops=flops, transcendentals=0, bytes_accessed=bytes_accessed
        ),
    )(x_p, w1, b1, w2, b2, w3, b3)

    return out_p[:B, :R]


def init_params(key, state_size, hidden_dim, state_rep_size):
    """Mimics PyTorch nn.Linear init (uniform +/- 1/sqrt(fan_in)).
    Weights stored pre-transposed as (in_features, out_features)."""
    keys = jax.random.split(key, 6)

    def linear(kw, kb, fan_in, fan_out):
        bound = 1.0 / jnp.sqrt(fan_in)
        w = jax.random.uniform(kw, (fan_in, fan_out), jnp.float32, -bound, bound)
        b = jax.random.uniform(kb, (1, fan_out), jnp.float32, -bound, bound)
        return w, b

    w1, b1 = linear(keys[0], keys[1], state_size, hidden_dim)
    w2, b2 = linear(keys[2], keys[3], hidden_dim, hidden_dim)
    w3, b3 = linear(keys[4], keys[5], hidden_dim, state_rep_size)
    return {"w1": w1, "b1": b1, "w2": w2, "b2": b2, "w3": w3, "b3": b3}


if __name__ == "__main__":
    # Module defaults: hidden_dim=128, state_rep_size=64. batch=50 exercises
    # batch padding (50 -> 64 rows, single grid step) and output slicing.
    batch = 50
    state_size = 16
    hidden_dim = 128
    state_rep_size = 64

    key = jax.random.PRNGKey(0)
    k_params, k_state = jax.random.split(key)

    params = init_params(k_params, state_size, hidden_dim, state_rep_size)
    state = jax.random.normal(k_state, (batch, state_size), dtype=jnp.float32)

    # Plain f32 reference.
    h1f = jnp.maximum(state @ params["w1"] + params["b1"], 0.0)
    h2f = jnp.maximum(h1f @ params["w2"] + params["b2"], 0.0)
    ref_f32 = h2f @ params["w3"] + params["b3"]

    # ---- f32 numerics-check path ----
    prepared_f32 = prepare_params(params, use_bf16=False)
    out_f32 = jax.block_until_ready(
        rnd_forward(state, prepared_f32, state_rep_size)
    )
    assert out_f32.shape == (batch, state_rep_size)
    assert jnp.allclose(out_f32, ref_f32, atol=1e-4, rtol=1e-4)

    # ---- bf16-operand path (default on all TPU generations) ----
    prepared = prepare_params(params, use_bf16=True)
    out_bf16 = jax.block_until_ready(
        rnd_forward(state, prepared, state_rep_size)
    )
    cdt = jnp.bfloat16
    x = state.astype(cdt)
    h1 = jnp.maximum(
        jnp.dot(x, params["w1"].astype(cdt), preferred_element_type=jnp.float32)
        + params["b1"], 0.0)
    h2 = jnp.maximum(
        jnp.dot(h1.astype(cdt), params["w2"].astype(cdt),
                preferred_element_type=jnp.float32) + params["b2"], 0.0)
    ref_bf16 = (jnp.dot(h2.astype(cdt), params["w3"].astype(cdt),
                        preferred_element_type=jnp.float32) + params["b3"])
    assert out_bf16.shape == (batch, state_rep_size)
    assert jnp.allclose(out_bf16, ref_bf16, atol=2e-3, rtol=2e-3)
    # Loose sanity check of the (intentional) bf16-operand math vs full f32.
    assert jnp.allclose(out_bf16, ref_f32, atol=1e-1, rtol=1e-1)

    print("KERNEL_OK")
</pallas_src>

<mosaic_0001>
module attributes {stable_mosaic.version = 11 : i64} {
  func.func @rnd_kernel(%arg0: i32, %arg1: memref<64x16xf32, #tpu.memory_space<vmem>>, %arg2: memref<16x128xf32, #tpu.memory_space<vmem>>, %arg3: memref<1x128xf32, #tpu.memory_space<vmem>>, %arg4: memref<128x128xf32, #tpu.memory_space<vmem>>, %arg5: memref<1x128xf32, #tpu.memory_space<vmem>>, %arg6: memref<128x128xf32, #tpu.memory_space<vmem>>, %arg7: memref<1x128xf32, #tpu.memory_space<vmem>>, %arg8: memref<64x128xf32, #tpu.memory_space<vmem>>) attributes {dimension_semantics = [#tpu.dimension_semantics<parallel>], iteration_bounds = array<i64: 1>, scalar_prefetch = 0 : i64, scratch_operands = 0 : i64, tpu.core_type = #tpu.core_type<tc>, window_params = [{transform_indices = @transform_0, window_bounds = array<i64: 64, 16>}, {pipeline_mode = #tpu.pipeline_mode<synchronous>, transform_indices = @transform_1, window_bounds = array<i64: 16, 128>}, {pipeline_mode = #tpu.pipeline_mode<synchronous>, transform_indices = @transform_2, window_bounds = array<i64: 1, 128>}, {pipeline_mode = #tpu.pipeline_mode<synchronous>, transform_indices = @transform_3, window_bounds = array<i64: 128, 128>}, {pipeline_mode = #tpu.pipeline_mode<synchronous>, transform_indices = @transform_4, window_bounds = array<i64: 1, 128>}, {pipeline_mode = #tpu.pipeline_mode<synchronous>, transform_indices = @transform_5, window_bounds = array<i64: 128, 128>}, {pipeline_mode = #tpu.pipeline_mode<synchronous>, transform_indices = @transform_6, window_bounds = array<i64: 1, 128>}, {transform_indices = @transform_7, window_bounds = array<i64: 64, 128>}]} {
    %c0 = arith.constant 0 : index
    %c0_0 = arith.constant 0 : index
    %0 = vector.load %arg1[%c0, %c0_0] : memref<64x16xf32, #tpu.memory_space<vmem>>, vector<64x16xf32>
    %c0_1 = arith.constant 0 : index
    %c0_2 = arith.constant 0 : index
    %1 = vector.load %arg2[%c0_1, %c0_2] : memref<16x128xf32, #tpu.memory_space<vmem>>, vector<16x128xf32>
    %cst = arith.constant dense<0.000000e+00> : vector<64x128xf32>
    %2 = tpu.matmul %0, %1, %cst {dimension_numbers = #tpu.dot_dimension_numbers<[1], [0], [0], [1], [0, 0, 1, 1], [], []>} : vector<64x16xf32>, vector<16x128xf32>, vector<64x128xf32> -> vector<64x128xf32>
    %c0_3 = arith.constant 0 : index
    %c0_4 = arith.constant 0 : index
    %3 = vector.load %arg3[%c0_3, %c0_4] : memref<1x128xf32, #tpu.memory_space<vmem>>, vector<1x128xf32>
    %4 = vector.broadcast %3 : vector<1x128xf32> to vector<64x128xf32>
    %5 = arith.addf %2, %4 : vector<64x128xf32>
    %cst_5 = arith.constant 0.000000e+00 : f32
    %6 = vector.broadcast %cst_5 : f32 to vector<64x128xf32>
    %7 = arith.maximumf %5, %6 : vector<64x128xf32>
    %c0_6 = arith.constant 0 : index
    %c0_7 = arith.constant 0 : index
    %8 = vector.load %arg4[%c0_6, %c0_7] : memref<128x128xf32, #tpu.memory_space<vmem>>, vector<128x128xf32>
    %cst_8 = arith.constant dense<0.000000e+00> : vector<64x128xf32>
    %9 = tpu.matmul %7, %8, %cst_8 {dimension_numbers = #tpu.dot_dimension_numbers<[1], [0], [0], [1], [0, 0, 1, 1], [], []>} : vector<64x128xf32>, vector<128x128xf32>, vector<64x128xf32> -> vector<64x128xf32>
    %c0_9 = arith.constant 0 : index
    %c0_10 = arith.constant 0 : index
    %10 = vector.load %arg5[%c0_9, %c0_10] : memref<1x128xf32, #tpu.memory_space<vmem>>, vector<1x128xf32>
    %11 = vector.broadcast %10 : vector<1x128xf32> to vector<64x128xf32>
    %12 = arith.addf %9, %11 : vector<64x128xf32>
    %cst_11 = arith.constant 0.000000e+00 : f32
    %13 = vector.broadcast %cst_11 : f32 to vector<64x128xf32>
    %14 = arith.maximumf %12, %13 : vector<64x128xf32>
    %c0_12 = arith.constant 0 : index
    %c0_13 = arith.constant 0 : index
    %15 = vector.load %arg6[%c0_12, %c0_13] : memref<128x128xf32, #tpu.memory_space<vmem>>, vector<128x128xf32>
    %cst_14 = arith.constant dense<0.000000e+00> : vector<64x128xf32>
    %16 = tpu.matmul %14, %15, %cst_14 {dimension_numbers = #tpu.dot_dimension_numbers<[1], [0], [0], [1], [0, 0, 1, 1], [], []>} : vector<64x128xf32>, vector<128x128xf32>, vector<64x128xf32> -> vector<64x128xf32>
    %c0_15 = arith.constant 0 : index
    %c0_16 = arith.constant 0 : index
    %17 = vector.load %arg7[%c0_15, %c0_16] : memref<1x128xf32, #tpu.memory_space<vmem>>, vector<1x128xf32>
    %18 = vector.broadcast %17 : vector<1x128xf32> to vector<64x128xf32>
    %19 = arith.addf %16, %18 : vector<64x128xf32>
    %c0_17 = arith.constant 0 : index
    %c0_18 = arith.constant 0 : index
    %20 = vector.load %arg8[%c0_17, %c0_18] : memref<64x128xf32, #tpu.memory_space<vmem>>, vector<64x128xf32>
    tpu.vector_store %arg8[%c0_17, %c0_18], %19 {strides = array<i32>} : memref<64x128xf32, #tpu.memory_space<vmem>>, vector<64x128xf32>,
    return
  }
  func.func @transform_0(%arg0: i32) -> (i32, i32) {
    %c0_i32 = arith.constant 0 : i32
    %c0_i32_0 = arith.constant 0 : i32
    return %arg0, %c0_i32 : i32, i32
  }
  func.func @transform_1(%arg0: i32) -> (i32, i32) {
    %c0_i32 = arith.constant 0 : i32
    %c0_i32_0 = arith.constant 0 : i32
    %c0_i32_1 = arith.constant 0 : i32
    return %c0_i32, %c0_i32_0 : i32, i32
  }
  func.func @transform_2(%arg0: i32) -> (i32, i32) {
    %c0_i32 = arith.constant 0 : i32
    %c0_i32_0 = arith.constant 0 : i32
    %c0_i32_1 = arith.constant 0 : i32
    return %c0_i32, %c0_i32_0 : i32, i32
  }
  func.func @transform_3(%arg0: i32) -> (i32, i32) {
    %c0_i32 = arith.constant 0 : i32
    %c0_i32_0 = arith.constant 0 : i32
    %c0_i32_1 = arith.constant 0 : i32
    return %c0_i32, %c0_i32_0 : i32, i32
  }
  func.func @transform_4(%arg0: i32) -> (i32, i32) {
    %c0_i32 = arith.constant 0 : i32
    %c0_i32_0 = arith.constant 0 : i32
    %c0_i32_1 = arith.constant 0 : i32
    return %c0_i32, %c0_i32_0 : i32, i32
  }
  func.func @transform_5(%arg0: i32) -> (i32, i32) {
    %c0_i32 = arith.constant 0 : i32
    %c0_i32_0 = arith.constant 0 : i32
    %c0_i32_1 = arith.constant 0 : i32
    return %c0_i32, %c0_i32_0 : i32, i32
  }
  func.func @transform_6(%arg0: i32) -> (i32, i32) {
    %c0_i32 = arith.constant 0 : i32
    %c0_i32_0 = arith.constant 0 : i32
    %c0_i32_1 = arith.constant 0 : i32
    return %c0_i32, %c0_i32_0 : i32, i32
  }
  func.func @transform_7(%arg0: i32) -> (i32, i32) {
    %c0_i32 = arith.constant 0 : i32
    %c0_i32_0 = arith.constant 0 : i32
    return %arg0, %c0_i32 : i32, i32
  }
}

</mosaic_0001>

<bundles_post_ra>
// kernel: rnd_forward.1
= control target key start
LH: loop header
LB: loop body
LE: loop exit
PB: predicated region body
PF: predicated region fallthrough
CT: control target
= control target key end

     0   :  { %12 = vsyncpa [#allocation3], 0  ;;  %s740_s24 = smov [#allocation2]   ;;  %s914_s0 = inlined_call_operand.vmem [shape: f32[64,16], index: 0, kind: input, shape index: {}]   ;;  %s915_s1 = inlined_call_operand.vmem [shape: f32[16,128], index: 1, kind: input, shape index: {}]   ;;  %s916_s2 = inlined_call_operand.vmem [shape: f32[1,128], index: 2, kind: input, shape index: {}]   ;;  %s917_s3 = inlined_call_operand.vmem [shape: f32[128,128], index: 3, kind: input, shape index: {}]   ;;  %s918_s4 = inlined_call_operand.vmem [shape: f32[1,128], index: 4, kind: input, shape index: {}]   ;;  %s919_s5 = inlined_call_operand.hbm [shape: f32[128,128], index: 5, kind: input, shape index: {}]   ;;  %s920_s6 = inlined_call_operand.vmem [shape: f32[1,128], index: 6, kind: input, shape index: {}]   ;;  %s921_s7 = inlined_call_operand.vmem [shape: f32[64,128], index: 7, kind: output, shape index: {}]  }
   0x1   :  { %s28_s25 = sshll.u32 %s740_s24, 4  ;;  %s716_s28 = scalar_lea.hbm %s919_s5, 2048  ;;  %s29_s25 = int_to_ptr.vmem [resolvable:$true] %s28_s25 }
   0x2   :  { %p717_p0 = scmp.ne.s32.totalorder %s919_s5, %s716_s28  ;;  %p720_p1 = scmp.lt.u32.totalorder %s716_s28, %s919_s5 }
   0x4   :  { %p722_p2 = pnand %p720_p1, %p717_p0 }
   0x6   :  { %725 = shalt.err (!%p722_p2)
}
   0x7   :  { %s726_s10 = scalar_lea.vmem %s29_s25, 2048  ;;  %p731_p4 = scmp.lt.s32.totalorder %s29_s25, %s29_s25 }
   0x8   :  { %p727_p3 = scmp.ne.s32.totalorder %s29_s25, %s726_s10  ;;  %p732_p5 = scmp.lt.s32.totalorder %s726_s10, %s726_s10 }
   0xa   :  { %p733_p6 = por %p732_p5, %p731_p4 }
   0xc   :  { %p734_p7 = pnand %p733_p6, %p727_p3 }
   0xe   :  { %737 = shalt.err (!%p734_p7)
}
   0xf   :  { %s741_s11 = smov 128   ;;  %s742_s12 = smov 8  }
  0x10   :  { %34 = dma.hbm_to_vmem [thread:$0]  %s919_s5, 2048, %s29_s25, [#allocation3], %s741_s11, %s741_s11, %s742_s12  }
  0x11   :  { %738 = dma.done.wait [#allocation3], 2048  }
  0x12   :  { %739 = vsyncadd [#allocation3], 4294965248  ;;  %vm57_vm0 = vcmask 130048   ;;  %v48_v0 = vld [vmem:[%s915_s1] sm:$0xff]  ;;  %v49_v1 = vld [vmem:[%s915_s1 + $0x8] sm:$0xff] }
  0x13   :  { %v40_v2 = vld [vmem:[%s914_s0] sm:$0xff]  ;;  %v645_v3 = vpack.c.bf16 %v49_v1, %v48_v0  ;;  %v196_v5 = vld [vmem:[%s917_s3 + $0x8] sm:$0xff]  ;;  %v197_v8 = vld [vmem:[%s917_s3 + $0x10] sm:$0xff] }
  0x14   :  { %545 = vmatprep.mubr.msk.f32.mxu0 %vm57_vm0, %v40_v2  ;;  %v195_v4 = vld [vmem:[%s917_s3] sm:$0xff]  ;;  %v41_v6 = vld [vmem:[%s914_s0 + $0x8] sm:$0xff]  ;;  %v198_v9 = vld [vmem:[%s917_s3 + $0x18] sm:$0xff] }
  0x15   :  { %646 = vmatprep.subr.bf16.mxu0 %v645_v3  ;;  %v649_v7 = vpack.c.bf16 %v196_v5, %v195_v4  ;;  %v42_v10 = vld [vmem:[%s914_s0 + $0x10] sm:$0xff]  ;;  %v653_v11 = vpack.c.bf16 %v198_v9, %v197_v8  ;;  %v199_v12 = vld [vmem:[%s917_s3 + $0x20] sm:$0xff]  ;;  %v200_v13 = vld [vmem:[%s917_s3 + $0x28] sm:$0xff] }
  0x16   :  { %648 = vmatpush3.bf16.msra.mxu0 %v645_v3  ;;  %v43_v14 = vld [vmem:[%s914_s0 + $0x18] sm:$0xff]  ;;  %v657_v15 = vpack.c.bf16 %v200_v13, %v199_v12  ;;  %v44_v16 = vld [vmem:[%s914_s0 + $0x20] sm:$0xff]  ;;  %v201_v17 = vld [vmem:[%s917_s3 + $0x30] sm:$0xff] }
  0x17   :  { %650 = vmatprep.subr.bf16.mxu1 %v649_v7  ;;  %v202_v18 = vld [vmem:[%s917_s3 + $0x38] sm:$0xff]  ;;  %v45_v19 = vld [vmem:[%s914_s0 + $0x28] sm:$0xff]  ;;  %v46_v21 = vld [vmem:[%s914_s0 + $0x30] sm:$0xff] }
  0x18   :  { %652 = vmatpush3.bf16.msra.mxu1 %v649_v7  ;;  %v661_v20 = vpack.c.bf16 %v202_v18, %v201_v17  ;;  %v203_v22 = vld [vmem:[%s917_s3 + $0x40] sm:$0xff]  ;;  %v204_v23 = vld [vmem:[%s917_s3 + $0x48] sm:$0xff]  ;;  %v47_v24 = vld [vmem:[%s914_s0 + $0x38] sm:$0xff] }
  0x19   :  { %546 = vmatmul.mubr.msk.f32.vlgmr.msra.gmra.mrb[0].mxu0 %vm57_vm0, %v41_v6  ;;  %654 = vmatprep.subr.bf16.mxu1 %v653_v11  ;;  %v665_v25 = vpack.c.bf16 %v204_v23, %v203_v22  ;;  %v205_v26 = vld [vmem:[%s917_s3 + $0x50] sm:$0xff]  ;;  %v206_v27 = vld [vmem:[%s917_s3 + $0x58] sm:$0xff]  ;;  %v207_v29 = vld [vmem:[%s917_s3 + $0x60] sm:$0xff] }
  0x1a   :  { %548 = vmatprep.mubr.msk.f32.mxu0 %vm57_vm0, %v42_v10  ;;  %v669_v28 = vpack.c.bf16 %v206_v27, %v205_v26  ;;  %v208_v30 = vld [vmem:[%s917_s3 + $0x68] sm:$0xff]  ;;  %v209_v32 = vld [vmem:[%s917_s3 + $0x70] sm:$0xff]  ;;  %v210_v33 = vld [vmem:[%s917_s3 + $0x78] sm:$0xff] }
  0x1b   :  { %v673_v31 = vpack.c.bf16 %v208_v30, %v207_v29  ;;  %v677_v34 = vpack.c.bf16 %v210_v33, %v209_v32  ;;  %v331_v35 = vld [vmem:[#allocation2] sm:$0xff]  ;;  %v332_v36 = vld [vmem:[#allocation2 + $0x8] sm:$0xff]  ;;  %v333_v37 = vld [vmem:[#allocation2 + $0x10] sm:$0xff] }
  0x1c   :  { %656 = vmatpush3.bf16.msra.mxu1 %v653_v11  ;;  %v681_v38 = vpack.c.bf16 %v332_v36, %v331_v35  ;;  %v334_v39 = vld [vmem:[#allocation2 + $0x18] sm:$0xff]  ;;  %v335_v41 = vld [vmem:[#allocation2 + $0x20] sm:$0xff]  ;;  %v336_v42 = vld [vmem:[#allocation2 + $0x28] sm:$0xff] }
  0x1d   :  { %549 = vmatmul.mubr.msk.f32.gmra.mrb[2].mxu0 %vm57_vm0, %v43_v14  ;;  %658 = vmatprep.subr.bf16.mxu1 %v657_v15  ;;  %v685_v40 = vpack.c.bf16 %v334_v39, %v333_v37  ;;  %v689_v43 = vpack.c.bf16 %v336_v42, %v335_v41  ;;  %v337_v44 = vld [vmem:[#allocation2 + $0x30] sm:$0xff]  ;;  %v338_v45 = vld [vmem:[#allocation2 + $0x38] sm:$0xff]  ;;  %v339_v47 = vld [vmem:[#allocation2 + $0x40] sm:$0xff] }
  0x1e   :  { %551 = vmatprep.mubr.msk.f32.mxu0 %vm57_vm0, %v44_v16  ;;  %682 = vmatprep.subr.bf16.mxu0 %v681_v38  ;;  %v693_v46 = vpack.c.bf16 %v338_v45, %v337_v44  ;;  %v340_v48 = vld [vmem:[#allocation2 + $0x48] sm:$0xff]  ;;  %v341_v50 = vld [vmem:[#allocation2 + $0x50] sm:$0xff]  ;;  %v342_v51 = vld [vmem:[#allocation2 + $0x58] sm:$0xff] }
  0x1f   :  { %684 = vmatpush3.bf16.msra.mxu0 %v681_v38  ;;  %v697_v49 = vpack.c.bf16 %v340_v48, %v339_v47  ;;  %v701_v52 = vpack.c.bf16 %v342_v51, %v341_v50  ;;  %v343_v53 = vld [vmem:[#allocation2 + $0x60] sm:$0xff]  ;;  %v344_v54 = vld [vmem:[#allocation2 + $0x68] sm:$0xff]  ;;  %v345_v17 = vld [vmem:[#allocation2 + $0x70] sm:$0xff] }
  0x20   :  { %660 = vmatpush3.bf16.msra.mxu1 %v657_v15  ;;  %686 = vmatprep.subr.bf16.mxu0 %v685_v40  ;;  %v705_v55 = vpack.c.bf16 %v344_v54, %v343_v53  ;;  %v472_v56 = vld [vmem:[%s916_s2] ss:$0 sm:$0xff]  ;;  %v346_v18 = vld [vmem:[#allocation2 + $0x78] sm:$0xff] }
  0x21   :  { %552 = vmatmul.mubr.msk.f32.gmra.mrb[4].mxu0 %vm57_vm0, %v45_v19  ;;  %662 = vmatprep.subr.bf16.mxu1 %v661_v20  ;;  %v709_v19 = vpack.c.bf16 %v346_v18, %v345_v17  ;;  %v482_v45 = vld [vmem:[%s920_s6] ss:$0 sm:$0xff] }
  0x22   :  { %554 = vmatprep.mubr.msk.f32.mxu0 %vm57_vm0, %v46_v21 }
  0x23   :  { %688 = vmatpush3.bf16.msra.mxu0 %v685_v40 }
  0x24   :  { %664 = vmatpush3.bf16.msra.mxu1 %v661_v20  ;;  %690 = vmatprep.subr.bf16.mxu0 %v689_v43  ;;  %v481_v20 = vld [vmem:[%s918_s4] ss:$0 sm:$0xff] }
  0x25   :  { %555 = vmatmul.mubr.msk.f32.gmra.mrb[6].mxu0 %vm57_vm0, %v47_v24  ;;  %666 = vmatprep.subr.bf16.mxu1 %v665_v25 }
  0x27   :  { %692 = vmatpush3.bf16.msra.mxu0 %v689_v43 }
  0x28   :  { %668 = vmatpush3.bf16.msra.mxu1 %v665_v25  ;;  %694 = vmatprep.subr.bf16.mxu0 %v693_v46 }
  0x29   :  { %670 = vmatprep.subr.bf16.mxu1 %v669_v28 }
  0x2b   :  { %696 = vmatpush3.bf16.msra.mxu0 %v693_v46 }
  0x2c   :  { %672 = vmatpush3.bf16.msra.mxu1 %v669_v28  ;;  %698 = vmatprep.subr.bf16.mxu0 %v697_v49 }
  0x2d   :  { %674 = vmatprep.subr.bf16.mxu1 %v673_v31 }
  0x2f   :  { %700 = vmatpush3.bf16.msra.mxu0 %v697_v49 }
  0x30   :  { %676 = vmatpush3.bf16.msra.mxu1 %v673_v31  ;;  %702 = vmatprep.subr.bf16.mxu0 %v701_v52 }
  0x31   :  { %678 = vmatprep.subr.bf16.mxu1 %v677_v34 }
  0x33   :  { %704 = vmatpush3.bf16.msra.mxu0 %v701_v52 }
  0x34   :  { %680 = vmatpush3.bf16.msra.mxu1 %v677_v34  ;;  %706 = vmatprep.subr.bf16.mxu0 %v705_v55 }
  0x37   :  { %708 = vmatpush3.bf16.msra.mxu0 %v705_v55 }
  0x38   :  { %710 = vmatprep.subr.bf16.mxu0 %v709_v19 }
  0x3b   :  { %712 = vmatpush3.bf16.msra.mxu0 %v709_v19 }
  0xec   :  { %v547_v57 = vpop.f32.mrb[0].mxu0 }
  0xed   :  { %v154_v58 = vadd.f32 %v547_v57, %v472_v56  ;;  %v148_v59 = vpop.f32.mrb[1].mxu0 }
  0xee   :  { %v149_v60 = vadd.f32 %v472_v56, %v148_v59 }
  0xef   :  { %v188_v63 = vmax.f32 %v154_v58, 0.0 }
  0xf0   :  { %v550_v61 = vpop.f32.mrb[2].mxu0  ;;  %v187_v62 = vmax.f32 %v149_v60, 0.0 }
  0xf1   :  { %v164_v0 = vadd.f32 %v550_v61, %v472_v56  ;;  %v158_v1 = vpop.f32.mrb[3].mxu0 }
  0xf2   :  { %v159_v2 = vadd.f32 %v472_v56, %v158_v1  ;;  %589 = vmatprep.mubr.f32.mxu1 %v187_v62 }
  0xf3   :  { %590 = vmatmul.mubr.f32.vlgmr.msra.gmra.mrb[0].mxu1 %v188_v63  ;;  %v190_v5 = vmax.f32 %v164_v0, 0.0 }
  0xf4   :  { %v189_v3 = vmax.f32 %v159_v2, 0.0  ;;  %v553_v4 = vpop.f32.mrb[4].mxu0 }
  0xf5   :  { %v174_v6 = vadd.f32 %v553_v4, %v472_v56  ;;  %v168_v7 = vpop.f32.mrb[5].mxu0 }
  0xf6   :  { %v169_v8 = vadd.f32 %v472_v56, %v168_v7  ;;  %592 = vmatprep.mubr.f32.mxu1 %v189_v3 }
  0xf7   :  { %593 = vmatmul.mubr.f32.gmra.mrb[2].mxu1 %v190_v5  ;;  %v192_v11 = vmax.f32 %v174_v6, 0.0 }
  0xf8   :  { %v191_v9 = vmax.f32 %v169_v8, 0.0  ;;  %v556_v10 = vpop.f32.mrb[6].mxu0 }
  0xf9   :  { %v184_v12 = vadd.f32 %v556_v10, %v472_v56  ;;  %v178_v13 = vpop.f32.mrb[7].mxu0 }
  0xfa   :  { %v179_v14 = vadd.f32 %v472_v56, %v178_v13  ;;  %595 = vmatprep.mubr.f32.mxu1 %v191_v9 }
  0xfb   :  { %596 = vmatmul.mubr.f32.gmra.mrb[4].mxu1 %v192_v11  ;;  %v194_v16 = vmax.f32 %v184_v12, 0.0 }
  0xfc   :  { %v193_v15 = vmax.f32 %v179_v14, 0.0 }
  0xfe   :  { %598 = vmatprep.mubr.f32.mxu1 %v193_v15 }
  0xff   :  { %599 = vmatmul.mubr.f32.gmra.mrb[6].mxu1 %v194_v16 }
 0x1c6   :  { %v591_v21 = vpop.f32.mrb[0].mxu1 }
 0x1c7   :  { %v290_v22 = vadd.f32 %v591_v21, %v481_v20  ;;  %v284_v23 = vpop.f32.mrb[1].mxu1 }
 0x1c8   :  { %v285_v24 = vadd.f32 %v481_v20, %v284_v23 }
 0x1c9   :  { %v324_v27 = vmax.f32 %v290_v22, 0.0 }
 0x1ca   :  { %v323_v25 = vmax.f32 %v285_v24, 0.0  ;;  %v594_v26 = vpop.f32.mrb[2].mxu1 }
 0x1cb   :  { %v300_v28 = vadd.f32 %v594_v26, %v481_v20  ;;  %v294_v29 = vpop.f32.mrb[3].mxu1 }
 0x1cc   :  { %v295_v30 = vadd.f32 %v481_v20, %v294_v29  ;;  %633 = vmatprep.mubr.f32.mxu0 %v323_v25 }
 0x1cd   :  { %634 = vmatmul.mubr.f32.vlgmr.msra.gmra.mrb[8].mxu0 %v324_v27  ;;  %v326_v33 = vmax.f32 %v300_v28, 0.0 }
 0x1ce   :  { %v325_v31 = vmax.f32 %v295_v30, 0.0  ;;  %v597_v32 = vpop.f32.mrb[4].mxu1 }
 0x1cf   :  { %v310_v34 = vadd.f32 %v597_v32, %v481_v20  ;;  %v304_v35 = vpop.f32.mrb[5].mxu1 }
 0x1d0   :  { %v305_v36 = vadd.f32 %v481_v20, %v304_v35  ;;  %636 = vmatprep.mubr.f32.mxu0 %v325_v31 }
 0x1d1   :  { %637 = vmatmul.mubr.f32.gmra.mrb[10].mxu0 %v326_v33  ;;  %v328_v39 = vmax.f32 %v310_v34, 0.0 }
 0x1d2   :  { %v327_v37 = vmax.f32 %v305_v36, 0.0  ;;  %v600_v38 = vpop.f32.mrb[6].mxu1 }
 0x1d3   :  { %v320_v40 = vadd.f32 %v600_v38, %v481_v20  ;;  %v314_v41 = vpop.f32.mrb[7].mxu1 }
 0x1d4   :  { %v315_v42 = vadd.f32 %v481_v20, %v314_v41  ;;  %639 = vmatprep.mubr.f32.mxu0 %v327_v37 }
 0x1d5   :  { %640 = vmatmul.mubr.f32.gmra.mrb[12].mxu0 %v328_v39  ;;  %v330_v44 = vmax.f32 %v320_v40, 0.0 }
 0x1d6   :  { %v329_v43 = vmax.f32 %v315_v42, 0.0 }
 0x1d8   :  { %642 = vmatprep.mubr.f32.mxu0 %v329_v43 }
 0x1d9   :  { %643 = vmatmul.mubr.f32.gmra.mrb[14].mxu0 %v330_v44 }
 0x2a0   :  { %v635_v46 = vpop.f32.mrb[8].mxu0 }
 0x2a1   :  { %v426_v47 = vadd.f32 %v635_v46, %v482_v45  ;;  %v420_v48 = vpop.f32.mrb[9].mxu0 }
 0x2a2   :  { %v421_v49 = vadd.f32 %v482_v45, %v420_v48 }
 0x2a3   :  { %460 = vst [vmem:[%s921_s7 + $0x8] sm:$0xff] %v426_v47 }
 0x2a4   :  { %459 = vst [vmem:[%s921_s7] sm:$0xff] %v421_v49  ;;  %v638_v50 = vpop.f32.mrb[10].mxu0 }
 0x2a5   :  { %v436_v51 = vadd.f32 %v638_v50, %v482_v45  ;;  %v430_v52 = vpop.f32.mrb[11].mxu0 }
 0x2a6   :  { %v431_v53 = vadd.f32 %v482_v45, %v430_v52 }
 0x2a7   :  { %462 = vst [vmem:[%s921_s7 + $0x18] sm:$0xff] %v436_v51 }
 0x2a8   :  { %461 = vst [vmem:[%s921_s7 + $0x10] sm:$0xff] %v431_v53  ;;  %v641_v54 = vpop.f32.mrb[12].mxu0 }
 0x2a9   :  { %v446_v55 = vadd.f32 %v641_v54, %v482_v45  ;;  %v440_v56 = vpop.f32.mrb[13].mxu0 }
 0x2aa   :  { %v441_v57 = vadd.f32 %v482_v45, %v440_v56 }
 0x2ab   :  { %464 = vst [vmem:[%s921_s7 + $0x28] sm:$0xff] %v446_v55 }
 0x2ac   :  { %463 = vst [vmem:[%s921_s7 + $0x20] sm:$0xff] %v441_v57  ;;  %v644_v58 = vpop.f32.mrb[14].mxu0 }
 0x2ad   :  { %v456_v59 = vadd.f32 %v644_v58, %v482_v45  ;;  %v450_v60 = vpop.f32.mrb[15].mxu0 }
 0x2ae   :  { %v451_v61 = vadd.f32 %v482_v45, %v450_v60 }
 0x2af   :  { %466 = vst [vmem:[%s921_s7 + $0x38] sm:$0xff] %v456_v59 }
 0x2b0   :  { %465 = vst [vmem:[%s921_s7 + $0x30] sm:$0xff] %v451_v61 }
 0x2b1   :  { %471 = vsyncpa [#allocation3], 1 }

</bundles_post_ra>
